<compile_context>
chip_gen: v6e
topology: v6e:2x2x1
jax: 0.10.0
libtpu: 0.0.40
codegen_flags: <defaults>
</compile_context>

<pallas_src>
import jax
import jax.numpy as jnp
from jax.experimental import pallas as pl
from jax.experimental.pallas import tpu as pltpu


def make_residual_block_kernel(N, L, Cin, Cout, K, pool_k, has_downsample,
                               eps=1e-5):
    pad = K // 2
    n_win = (L - pool_k) // pool_k + 1        # MaxPool1d default stride == kernel
    inv_cnt = 1.0 / float(N * L)

    def kernel(x_ref, w1_ref, w2_ref, bnp_ref, o_ref):
        x = x_ref[...]                         # (N, Cin, L)  NCL: channels on sublanes
        w1 = w1_ref[...]                       # (K [+1], Cout, Cin)  taps [+ 1x1 downsample]
        w2 = w2_ref[...]                       # (K, Cout, Cout)
        bnp = bnp_ref[...]                     # (Cout, 4 | 6)  [g1, be1, g2, be2, (gd, bed)]

        # Static (L, L) shift-and-mask matrices: (X @ S_s)[:, l] == X[:, l + s],
        # and 0 whenever l + s falls outside [0, L) — i.e. the conv's zero halo.
        row = jax.lax.broadcasted_iota(jnp.int32, (L, L), 0)
        col = jax.lax.broadcasted_iota(jnp.int32, (L, L), 1)
        shift_mat = {s: (row == col + s).astype(jnp.float32)
                     for s in range(-pad, pad + 1) if s != 0}

        def conv(x_n, w_taps):
            # x_n: (C, L); w_taps: (K, Cout, C).  Centre tap is one matmul; each
            # off-centre tap is a shift matmul + weight matmul on the idle MXU.
            acc = jnp.dot(w_taps[pad], x_n, preferred_element_type=jnp.float32)
            for j in range(K):
                s = j - pad
                if s == 0:
                    continue
                x_s = jnp.dot(x_n, shift_mat[s], preferred_element_type=jnp.float32)
                acc = acc + jnp.dot(w_taps[j], x_s,
                                    preferred_element_type=jnp.float32)
            return acc                                                 # (Cout, L)

        def bn(h, col_idx):
            # Training-mode BatchNorm1d: single-pass biased batch stats over all
            # N*L positions, folded into one per-channel scale + shift.
            g = bnp[:, col_idx:col_idx + 1]                            # (Cout, 1)
            be = bnp[:, col_idx + 1:col_idx + 2]                       # (Cout, 1)
            s1 = jnp.sum(h, axis=-1, keepdims=True)                    # (N, Cout, 1)
            s2 = jnp.sum(h * h, axis=-1, keepdims=True)
            m = jnp.sum(s1, axis=0, keepdims=True) * inv_cnt           # (1, Cout, 1)
            v = jnp.sum(s2, axis=0, keepdims=True) * inv_cnt - m * m
            scale = jax.lax.rsqrt(v + eps) * g                         # (1, Cout, 1)
            shift = be - m * scale
            return h * scale + shift

        # ---- conv1 -> bn1 -> relu  (static per-batch loop; N is tiny, trace-time)
        h = jnp.stack([conv(x[n], w1[:K]) for n in range(N)], axis=0)  # (N, Cout, L)
        h = jnp.maximum(bn(h, 0), 0.0)

        # ---- conv2 -> bn2 (no re-pad: shifts handled by the same S_s matrices)
        h2 = jnp.stack([conv(h[n], w2) for n in range(N)], axis=0)
        h2 = bn(h2, 2)

        # ---- identity / downsample (1x1 conv + BN)
        if has_downsample:
            ident = jnp.stack(
                [jnp.dot(w1[K], x[n], preferred_element_type=jnp.float32)
                 for n in range(N)], axis=0)                           # (N, Cout, L)
            ident = bn(ident, 4)
        else:
            ident = x                                                  # Cin == Cout

        out = jnp.maximum(h2 + ident, 0.0)                             # (N, Cout, L)

        # ---- MaxPool1d(pool_k, stride=pool_k): static lane slice + lane max,
        # stored directly in the module's final NCL shape (n_win == 1 here).
        wins = [jnp.max(out[:, :, w * pool_k:(w + 1) * pool_k],
                        axis=-1, keepdims=True) for w in range(n_win)]
        o_ref[...] = wins[0] if n_win == 1 else jnp.concatenate(wins, axis=-1)

    return kernel, n_win


def residual_block_forward(x, params, *, kernel_size, max_len):
    """x: (N, Cin, L) float32 — PyTorch NCL convention.  Returns (N, Cout, n_win)."""
    N, Cin, L = x.shape
    Cout = params["w1"].shape[0]
    K = kernel_size
    assert K % 2 == 1, "odd kernel_size assumed (matches padding = K // 2)"
    pool_k = max_len - 3 + 1
    has_ds = Cin != Cout

    kernel, n_win = make_residual_block_kernel(N, L, Cin, Cout, K, pool_k, has_ds)

    # Pack parameters into 3 small slabs (in real use these would be pre-packed
    # once outside the step).  Conv biases are intentionally omitted: the
    # training-mode BatchNorm mean subtraction cancels them exactly.
    f32 = jnp.float32
    w1_slab = jnp.transpose(jnp.asarray(params["w1"], f32), (2, 0, 1))   # (K, Cout, Cin)
    if has_ds:
        wd = jnp.asarray(params["wd"], f32)[:, :, 0][None]               # (1, Cout, Cin)
        w1_slab = jnp.concatenate([w1_slab, wd], axis=0)                 # (K+1, Cout, Cin)
    w2_slab = jnp.transpose(jnp.asarray(params["w2"], f32), (2, 0, 1))   # (K, Cout, Cout)
    cols = ["g1", "be1", "g2", "be2"] + (["gd", "bed"] if has_ds else [])
    bnp = jnp.stack([jnp.asarray(params[c], f32) for c in cols], axis=1)  # (Cout, 4|6)

    vm = pl.BlockSpec(memory_space=pltpu.MemorySpace.VMEM)
    return pl.pallas_call(
        kernel,
        out_shape=jax.ShapeDtypeStruct((N, Cout, n_win), jnp.float32),
        in_specs=[vm, vm, vm, vm],
        out_specs=vm,
    )(jnp.asarray(x, f32), w1_slab, w2_slab, bnp)


def reference_forward(x, params, *, kernel_size, pool_k, eps=1e-5):
    # Pure-JAX reference mirroring the PyTorch module (training-mode BN),
    # including the conv biases the kernel drops (they cancel under BN).
    def conv1d(x, w, b, pad):
        y = jax.lax.conv_general_dilated(
            x, w, window_strides=(1,), padding=[(pad, pad)],
            dimension_numbers=("NCH", "OIH", "NCH"))
        return y + b[None, :, None]

    def bn(h, g, be):
        m = jnp.mean(h, axis=(0, 2), keepdims=True)
        v = jnp.mean((h - m) ** 2, axis=(0, 2), keepdims=True)
        return (h - m) / jnp.sqrt(v + eps) * g[None, :, None] + be[None, :, None]

    pad = kernel_size // 2
    h = jax.nn.relu(bn(conv1d(x, params["w1"], params["b1"], pad),
                       params["g1"], params["be1"]))
    h = bn(conv1d(h, params["w2"], params["b2"], pad),
           params["g2"], params["be2"])
    if params["w1"].shape[0] != x.shape[1]:
        ident = bn(conv1d(x, params["wd"], params["bd"], 0),
                   params["gd"], params["bed"])
    else:
        ident = x
    out = jax.nn.relu(h + ident)
    N, C, L = out.shape
    n_win = (L - pool_k) // pool_k + 1
    out = out[:, :, : n_win * pool_k].reshape(N, C, n_win, pool_k)
    return jnp.max(out, axis=-1)


if __name__ == "__main__":
    # ResidualBlock(in_channels=4, out_channels=8, kernel_size=3, max_len=16)
    N, Cin, Cout, K, max_len = 2, 4, 8, 3, 16
    pool_k = max_len - 3 + 1                   # nn.MaxPool1d(max_len - 3 + 1)

    keys = jax.random.split(jax.random.PRNGKey(0), 13)
    params = {
        "w1": 0.3 * jax.random.normal(keys[0], (Cout, Cin, K), jnp.float32),
        "b1": 0.1 * jax.random.normal(keys[1], (Cout,), jnp.float32),
        "g1": 1.0 + 0.1 * jax.random.normal(keys[2], (Cout,), jnp.float32),
        "be1": 0.1 * jax.random.normal(keys[3], (Cout,), jnp.float32),
        "w2": 0.3 * jax.random.normal(keys[4], (Cout, Cout, K), jnp.float32),
        "b2": 0.1 * jax.random.normal(keys[5], (Cout,), jnp.float32),
        "g2": 1.0 + 0.1 * jax.random.normal(keys[6], (Cout,), jnp.float32),
        "be2": 0.1 * jax.random.normal(keys[7], (Cout,), jnp.float32),
        "wd": 0.3 * jax.random.normal(keys[8], (Cout, Cin, 1), jnp.float32),
        "bd": 0.1 * jax.random.normal(keys[9], (Cout,), jnp.float32),
        "gd": 1.0 + 0.1 * jax.random.normal(keys[10], (Cout,), jnp.float32),
        "bed": 0.1 * jax.random.normal(keys[11], (Cout,), jnp.float32),
    }
    x = jax.random.normal(keys[12], (N, Cin, max_len), jnp.float32)

    fwd = jax.jit(lambda xx, pp: residual_block_forward(
        xx, pp, kernel_size=K, max_len=max_len))
    out = jax.block_until_ready(fwd(x, params))

    ref = reference_forward(x, params, kernel_size=K, pool_k=pool_k)
    assert out.shape == ref.shape, (out.shape, ref.shape)
    err = float(jnp.max(jnp.abs(out - ref)))
    assert err < 1e-3, f"max abs err too large: {err}"
    print("KERNEL_OK")
</pallas_src>

<mosaic_0001>
module attributes {stable_mosaic.version = 11 : i64} {
  func.func @kernel(%arg0: memref<2x4x16xf32, #tpu.memory_space<vmem>>, %arg1: memref<4x8x4xf32, #tpu.memory_space<vmem>>, %arg2: memref<3x8x8xf32, #tpu.memory_space<vmem>>, %arg3: memref<8x6xf32, #tpu.memory_space<vmem>>, %arg4: memref<2x8x1xf32, #tpu.memory_space<vmem>>) attributes {dimension_semantics = [], scalar_prefetch = 0 : i64, scratch_operands = 0 : i64, tpu.core_type = #tpu.core_type<tc>} {
    %c0 = arith.constant 0 : index
    %c0_0 = arith.constant 0 : index
    %c0_1 = arith.constant 0 : index
    %0 = vector.load %arg0[%c0, %c0_0, %c0_1] : memref<2x4x16xf32, #tpu.memory_space<vmem>>, vector<2x4x16xf32>
    %c0_2 = arith.constant 0 : index
    %c0_3 = arith.constant 0 : index
    %c0_4 = arith.constant 0 : index
    %1 = vector.load %arg1[%c0_2, %c0_3, %c0_4] : memref<4x8x4xf32, #tpu.memory_space<vmem>>, vector<4x8x4xf32>
    %c0_5 = arith.constant 0 : index
    %c0_6 = arith.constant 0 : index
    %c0_7 = arith.constant 0 : index
    %2 = vector.load %arg2[%c0_5, %c0_6, %c0_7] : memref<3x8x8xf32, #tpu.memory_space<vmem>>, vector<3x8x8xf32>
    %c0_8 = arith.constant 0 : index
    %c0_9 = arith.constant 0 : index
    %3 = vector.load %arg3[%c0_8, %c0_9] : memref<8x6xf32, #tpu.memory_space<vmem>>, vector<8x6xf32>
    %4 = tpu.iota {dimensions = array<i32: 0>} : vector<16x16xi32>
    %5 = tpu.iota {dimensions = array<i32: 1>} : vector<16x16xi32>
    %c-1_i32 = arith.constant -1 : i32
    %6 = vector.broadcast %c-1_i32 : i32 to vector<16x16xi32>
    %7 = arith.addi %5, %6 : vector<16x16xi32>
    %8 = arith.cmpi eq, %4, %7 : vector<16x16xi32>
    %9 = arith.extui %8 : vector<16x16xi1> to vector<16x16xi32>
    %10 = arith.sitofp %9 : vector<16x16xi32> to vector<16x16xf32>
    %c1_i32 = arith.constant 1 : i32
    %11 = vector.broadcast %c1_i32 : i32 to vector<16x16xi32>
    %12 = arith.addi %5, %11 : vector<16x16xi32>
    %13 = arith.cmpi eq, %4, %12 : vector<16x16xi32>
    %14 = arith.extui %13 : vector<16x16xi1> to vector<16x16xi32>
    %15 = arith.sitofp %14 : vector<16x16xi32> to vector<16x16xf32>
    %16 = vector.extract_strided_slice %0 {offsets = [0, 0, 0], sizes = [1, 4, 16], strides = [1, 1, 1]} : vector<2x4x16xf32> to vector<1x4x16xf32>
    %17 = vector.shape_cast %16 : vector<1x4x16xf32> to vector<4x16xf32>
    %18 = vector.extract_strided_slice %1 {offsets = [0, 0, 0], sizes = [3, 8, 4], strides = [1, 1, 1]} : vector<4x8x4xf32> to vector<3x8x4xf32>
    %19 = vector.extract_strided_slice %18 {offsets = [1, 0, 0], sizes = [1, 8, 4], strides = [1, 1, 1]} : vector<3x8x4xf32> to vector<1x8x4xf32>
    %20 = vector.shape_cast %19 : vector<1x8x4xf32> to vector<8x4xf32>
    %cst = arith.constant dense<0.000000e+00> : vector<8x16xf32>
    %21 = tpu.matmul %20, %17, %cst {dimension_numbers = #tpu.dot_dimension_numbers<[1], [0], [0], [1], [0, 0, 1, 1], [], []>} : vector<8x4xf32>, vector<4x16xf32>, vector<8x16xf32> -> vector<8x16xf32>
    %cst_10 = arith.constant dense<0.000000e+00> : vector<4x16xf32>
    %22 = tpu.matmul %17, %10, %cst_10 {dimension_numbers = #tpu.dot_dimension_numbers<[1], [0], [0], [1], [0, 0, 1, 1], [], []>} : vector<4x16xf32>, vector<16x16xf32>, vector<4x16xf32> -> vector<4x16xf32>
    %23 = vector.extract_strided_slice %18 {offsets = [0, 0, 0], sizes = [1, 8, 4], strides = [1, 1, 1]} : vector<3x8x4xf32> to vector<1x8x4xf32>
    %24 = vector.shape_cast %23 : vector<1x8x4xf32> to vector<8x4xf32>
    %cst_11 = arith.constant dense<0.000000e+00> : vector<8x16xf32>
    %25 = tpu.matmul %24, %22, %cst_11 {dimension_numbers = #tpu.dot_dimension_numbers<[1], [0], [0], [1], [0, 0, 1, 1], [], []>} : vector<8x4xf32>, vector<4x16xf32>, vector<8x16xf32> -> vector<8x16xf32>
    %26 = arith.addf %21, %25 : vector<8x16xf32>
    %cst_12 = arith.constant dense<0.000000e+00> : vector<4x16xf32>
    %27 = tpu.matmul %17, %15, %cst_12 {dimension_numbers = #tpu.dot_dimension_numbers<[1], [0], [0], [1], [0, 0, 1, 1], [], []>} : vector<4x16xf32>, vector<16x16xf32>, vector<4x16xf32> -> vector<4x16xf32>
    %28 = vector.extract_strided_slice %18 {offsets = [2, 0, 0], sizes = [1, 8, 4], strides = [1, 1, 1]} : vector<3x8x4xf32> to vector<1x8x4xf32>
    %29 = vector.shape_cast %28 : vector<1x8x4xf32> to vector<8x4xf32>
    %cst_13 = arith.constant dense<0.000000e+00> : vector<8x16xf32>
    %30 = tpu.matmul %29, %27, %cst_13 {dimension_numbers = #tpu.dot_dimension_numbers<[1], [0], [0], [1], [0, 0, 1, 1], [], []>} : vector<8x4xf32>, vector<4x16xf32>, vector<8x16xf32> -> vector<8x16xf32>
    %31 = arith.addf %26, %30 : vector<8x16xf32>
    %32 = vector.extract_strided_slice %0 {offsets = [1, 0, 0], sizes = [1, 4, 16], strides = [1, 1, 1]} : vector<2x4x16xf32> to vector<1x4x16xf32>
    %33 = vector.shape_cast %32 : vector<1x4x16xf32> to vector<4x16xf32>
    %34 = vector.extract_strided_slice %1 {offsets = [0, 0, 0], sizes = [3, 8, 4], strides = [1, 1, 1]} : vector<4x8x4xf32> to vector<3x8x4xf32>
    %35 = vector.extract_strided_slice %34 {offsets = [1, 0, 0], sizes = [1, 8, 4], strides = [1, 1, 1]} : vector<3x8x4xf32> to vector<1x8x4xf32>
    %36 = vector.shape_cast %35 : vector<1x8x4xf32> to vector<8x4xf32>
    %cst_14 = arith.constant dense<0.000000e+00> : vector<8x16xf32>
    %37 = tpu.matmul %36, %33, %cst_14 {dimension_numbers = #tpu.dot_dimension_numbers<[1], [0], [0], [1], [0, 0, 1, 1], [], []>} : vector<8x4xf32>, vector<4x16xf32>, vector<8x16xf32> -> vector<8x16xf32>
    %cst_15 = arith.constant dense<0.000000e+00> : vector<4x16xf32>
    %38 = tpu.matmul %33, %10, %cst_15 {dimension_numbers = #tpu.dot_dimension_numbers<[1], [0], [0], [1], [0, 0, 1, 1], [], []>} : vector<4x16xf32>, vector<16x16xf32>, vector<4x16xf32> -> vector<4x16xf32>
    %39 = vector.extract_strided_slice %34 {offsets = [0, 0, 0], sizes = [1, 8, 4], strides = [1, 1, 1]} : vector<3x8x4xf32> to vector<1x8x4xf32>
    %40 = vector.shape_cast %39 : vector<1x8x4xf32> to vector<8x4xf32>
    %cst_16 = arith.constant dense<0.000000e+00> : vector<8x16xf32>
    %41 = tpu.matmul %40, %38, %cst_16 {dimension_numbers = #tpu.dot_dimension_numbers<[1], [0], [0], [1], [0, 0, 1, 1], [], []>} : vector<8x4xf32>, vector<4x16xf32>, vector<8x16xf32> -> vector<8x16xf32>
    %42 = arith.addf %37, %41 : vector<8x16xf32>
    %cst_17 = arith.constant dense<0.000000e+00> : vector<4x16xf32>
    %43 = tpu.matmul %33, %15, %cst_17 {dimension_numbers = #tpu.dot_dimension_numbers<[1], [0], [0], [1], [0, 0, 1, 1], [], []>} : vector<4x16xf32>, vector<16x16xf32>, vector<4x16xf32> -> vector<4x16xf32>
    %44 = vector.extract_strided_slice %34 {offsets = [2, 0, 0], sizes = [1, 8, 4], strides = [1, 1, 1]} : vector<3x8x4xf32> to vector<1x8x4xf32>
    %45 = vector.shape_cast %44 : vector<1x8x4xf32> to vector<8x4xf32>
    %cst_18 = arith.constant dense<0.000000e+00> : vector<8x16xf32>
    %46 = tpu.matmul %45, %43, %cst_18 {dimension_numbers = #tpu.dot_dimension_numbers<[1], [0], [0], [1], [0, 0, 1, 1], [], []>} : vector<8x4xf32>, vector<4x16xf32>, vector<8x16xf32> -> vector<8x16xf32>
    %47 = arith.addf %42, %46 : vector<8x16xf32>
    %48 = vector.shape_cast %31 : vector<8x16xf32> to vector<1x8x16xf32>
    %49 = vector.shape_cast %47 : vector<8x16xf32> to vector<1x8x16xf32>
    %50 = tpu.concatenate %48, %49 in 0 : vector<1x8x16xf32>, vector<1x8x16xf32> -> vector<2x8x16xf32>
    %51 = vector.extract_strided_slice %3 {offsets = [0, 0], sizes = [8, 1], strides = [1, 1]} : vector<8x6xf32> to vector<8x1xf32>
    %52 = vector.extract_strided_slice %3 {offsets = [0, 1], sizes = [8, 1], strides = [1, 1]} : vector<8x6xf32> to vector<8x1xf32>
    %cst_19 = arith.constant dense<0.000000e+00> : vector<2x8xf32>
    %53 = vector.multi_reduction <add>, %50, %cst_19 [2] : vector<2x8x16xf32> to vector<2x8xf32>
    %54 = vector.shape_cast %53 : vector<2x8xf32> to vector<2x8x1xf32>
    %55 = arith.mulf %50, %50 : vector<2x8x16xf32>
    %cst_20 = arith.constant dense<0.000000e+00> : vector<2x8xf32>
    %56 = vector.multi_reduction <add>, %55, %cst_20 [2] : vector<2x8x16xf32> to vector<2x8xf32>
    %57 = vector.shape_cast %56 : vector<2x8xf32> to vector<2x8x1xf32>
    %cst_21 = arith.constant dense<0.000000e+00> : vector<8x1xf32>
    %58 = vector.multi_reduction <add>, %54, %cst_21 [0] : vector<2x8x1xf32> to vector<8x1xf32>
    %59 = vector.shape_cast %58 : vector<8x1xf32> to vector<1x8x1xf32>
    %cst_22 = arith.constant 3.125000e-02 : f32
    %60 = vector.broadcast %cst_22 : f32 to vector<1x8x1xf32>
    %61 = arith.mulf %59, %60 : vector<1x8x1xf32>
    %cst_23 = arith.constant dense<0.000000e+00> : vector<8x1xf32>
    %62 = vector.multi_reduction <add>, %57, %cst_23 [0] : vector<2x8x1xf32> to vector<8x1xf32>
    %63 = vector.shape_cast %62 : vector<8x1xf32> to vector<1x8x1xf32>
    %cst_24 = arith.constant 3.125000e-02 : f32
    %64 = vector.broadcast %cst_24 : f32 to vector<1x8x1xf32>
    %65 = arith.mulf %63, %64 : vector<1x8x1xf32>
    %66 = arith.mulf %61, %61 : vector<1x8x1xf32>
    %67 = arith.subf %65, %66 : vector<1x8x1xf32>
    %cst_25 = arith.constant 9.99999974E-6 : f32
    %68 = vector.broadcast %cst_25 : f32 to vector<1x8x1xf32>
    %69 = arith.addf %67, %68 : vector<1x8x1xf32>
    %70 = math.rsqrt %69 : vector<1x8x1xf32>
    %71 = vector.shape_cast %51 : vector<8x1xf32> to vector<1x8x1xf32>
    %72 = arith.mulf %70, %71 : vector<1x8x1xf32>
    %73 = arith.mulf %61, %72 : vector<1x8x1xf32>
    %74 = vector.shape_cast %52 : vector<8x1xf32> to vector<1x8x1xf32>
    %75 = arith.subf %74, %73 : vector<1x8x1xf32>
    %76 = vector.broadcast %72 : vector<1x8x1xf32> to vector<2x8x16xf32>
    %77 = arith.mulf %50, %76 : vector<2x8x16xf32>
    %78 = vector.broadcast %75 : vector<1x8x1xf32> to vector<2x8x16xf32>
    %79 = arith.addf %77, %78 : vector<2x8x16xf32>
    %cst_26 = arith.constant 0.000000e+00 : f32
    %80 = vector.broadcast %cst_26 : f32 to vector<2x8x16xf32>
    %81 = arith.maximumf %79, %80 : vector<2x8x16xf32>
    %82 = vector.extract_strided_slice %81 {offsets = [0, 0, 0], sizes = [1, 8, 16], strides = [1, 1, 1]} : vector<2x8x16xf32> to vector<1x8x16xf32>
    %83 = vector.shape_cast %82 : vector<1x8x16xf32> to vector<8x16xf32>
    %84 = vector.extract_strided_slice %2 {offsets = [1, 0, 0], sizes = [1, 8, 8], strides = [1, 1, 1]} : vector<3x8x8xf32> to vector<1x8x8xf32>
    %85 = vector.shape_cast %84 : vector<1x8x8xf32> to vector<8x8xf32>
    %cst_27 = arith.constant dense<0.000000e+00> : vector<8x16xf32>
    %86 = tpu.matmul %85, %83, %cst_27 {dimension_numbers = #tpu.dot_dimension_numbers<[1], [0], [0], [1], [0, 0, 1, 1], [], []>} : vector<8x8xf32>, vector<8x16xf32>, vector<8x16xf32> -> vector<8x16xf32>
    %cst_28 = arith.constant dense<0.000000e+00> : vector<8x16xf32>
    %87 = tpu.matmul %83, %10, %cst_28 {dimension_numbers = #tpu.dot_dimension_numbers<[1], [0], [0], [1], [0, 0, 1, 1], [], []>} : vector<8x16xf32>, vector<16x16xf32>, vector<8x16xf32> -> vector<8x16xf32>
    %88 = vector.extract_strided_slice %2 {offsets = [0, 0, 0], sizes = [1, 8, 8], strides = [1, 1, 1]} : vector<3x8x8xf32> to vector<1x8x8xf32>
    %89 = vector.shape_cast %88 : vector<1x8x8xf32> to vector<8x8xf32>
    %cst_29 = arith.constant dense<0.000000e+00> : vector<8x16xf32>
    %90 = tpu.matmul %89, %87, %cst_29 {dimension_numbers = #tpu.dot_dimension_numbers<[1], [0], [0], [1], [0, 0, 1, 1], [], []>} : vector<8x8xf32>, vector<8x16xf32>, vector<8x16xf32> -> vector<8x16xf32>
    %91 = arith.addf %86, %90 : vector<8x16xf32>
    %cst_30 = arith.constant dense<0.000000e+00> : vector<8x16xf32>
    %92 = tpu.matmul %83, %15, %cst_30 {dimension_numbers = #tpu.dot_dimension_numbers<[1], [0], [0], [1], [0, 0, 1, 1], [], []>} : vector<8x16xf32>, vector<16x16xf32>, vector<8x16xf32> -> vector<8x16xf32>
    %93 = vector.extract_strided_slice %2 {offsets = [2, 0, 0], sizes = [1, 8, 8], strides = [1, 1, 1]} : vector<3x8x8xf32> to vector<1x8x8xf32>
    %94 = vector.shape_cast %93 : vector<1x8x8xf32> to vector<8x8xf32>
    %cst_31 = arith.constant dense<0.000000e+00> : vector<8x16xf32>
    %95 = tpu.matmul %94, %92, %cst_31 {dimension_numbers = #tpu.dot_dimension_numbers<[1], [0], [0], [1], [0, 0, 1, 1], [], []>} : vector<8x8xf32>, vector<8x16xf32>, vector<8x16xf32> -> vector<8x16xf32>
    %96 = arith.addf %91, %95 : vector<8x16xf32>
    %97 = vector.extract_strided_slice %81 {offsets = [1, 0, 0], sizes = [1, 8, 16], strides = [1, 1, 1]} : vector<2x8x16xf32> to vector<1x8x16xf32>
    %98 = vector.shape_cast %97 : vector<1x8x16xf32> to vector<8x16xf32>
    %99 = vector.extract_strided_slice %2 {offsets = [1, 0, 0], sizes = [1, 8, 8], strides = [1, 1, 1]} : vector<3x8x8xf32> to vector<1x8x8xf32>
    %100 = vector.shape_cast %99 : vector<1x8x8xf32> to vector<8x8xf32>
    %cst_32 = arith.constant dense<0.000000e+00> : vector<8x16xf32>
    %101 = tpu.matmul %100, %98, %cst_32 {dimension_numbers = #tpu.dot_dimension_numbers<[1], [0], [0], [1], [0, 0, 1, 1], [], []>} : vector<8x8xf32>, vector<8x16xf32>, vector<8x16xf32> -> vector<8x16xf32>
    %cst_33 = arith.constant dense<0.000000e+00> : vector<8x16xf32>
    %102 = tpu.matmul %98, %10, %cst_33 {dimension_numbers = #tpu.dot_dimension_numbers<[1], [0], [0], [1], [0, 0, 1, 1], [], []>} : vector<8x16xf32>, vector<16x16xf32>, vector<8x16xf32> -> vector<8x16xf32>
    %103 = vector.extract_strided_slice %2 {offsets = [0, 0, 0], sizes = [1, 8, 8], strides = [1, 1, 1]} : vector<3x8x8xf32> to vector<1x8x8xf32>
    %104 = vector.shape_cast %103 : vector<1x8x8xf32> to vector<8x8xf32>
    %cst_34 = arith.constant dense<0.000000e+00> : vector<8x16xf32>
    %105 = tpu.matmul %104, %102, %cst_34 {dimension_numbers = #tpu.dot_dimension_numbers<[1], [0], [0], [1], [0, 0, 1, 1], [], []>} : vector<8x8xf32>, vector<8x16xf32>, vector<8x16xf32> -> vector<8x16xf32>
    %106 = arith.addf %101, %105 : vector<8x16xf32>
    %cst_35 = arith.constant dense<0.000000e+00> : vector<8x16xf32>
    %107 = tpu.matmul %98, %15, %cst_35 {dimension_numbers = #tpu.dot_dimension_numbers<[1], [0], [0], [1], [0, 0, 1, 1], [], []>} : vector<8x16xf32>, vector<16x16xf32>, vector<8x16xf32> -> vector<8x16xf32>
    %108 = vector.extract_strided_slice %2 {offsets = [2, 0, 0], sizes = [1, 8, 8], strides = [1, 1, 1]} : vector<3x8x8xf32> to vector<1x8x8xf32>
    %109 = vector.shape_cast %108 : vector<1x8x8xf32> to vector<8x8xf32>
    %cst_36 = arith.constant dense<0.000000e+00> : vector<8x16xf32>
    %110 = tpu.matmul %109, %107, %cst_36 {dimension_numbers = #tpu.dot_dimension_numbers<[1], [0], [0], [1], [0, 0, 1, 1], [], []>} : vector<8x8xf32>, vector<8x16xf32>, vector<8x16xf32> -> vector<8x16xf32>
    %111 = arith.addf %106, %110 : vector<8x16xf32>
    %112 = vector.shape_cast %96 : vector<8x16xf32> to vector<1x8x16xf32>
    %113 = vector.shape_cast %111 : vector<8x16xf32> to vector<1x8x16xf32>
    %114 = tpu.concatenate %112, %113 in 0 : vector<1x8x16xf32>, vector<1x8x16xf32> -> vector<2x8x16xf32>
    %115 = vector.extract_strided_slice %3 {offsets = [0, 2], sizes = [8, 1], strides = [1, 1]} : vector<8x6xf32> to vector<8x1xf32>
    %116 = vector.extract_strided_slice %3 {offsets = [0, 3], sizes = [8, 1], strides = [1, 1]} : vector<8x6xf32> to vector<8x1xf32>
    %cst_37 = arith.constant dense<0.000000e+00> : vector<2x8xf32>
    %117 = vector.multi_reduction <add>, %114, %cst_37 [2] : vector<2x8x16xf32> to vector<2x8xf32>
    %118 = vector.shape_cast %117 : vector<2x8xf32> to vector<2x8x1xf32>
    %119 = arith.mulf %114, %114 : vector<2x8x16xf32>
    %cst_38 = arith.constant dense<0.000000e+00> : vector<2x8xf32>
    %120 = vector.multi_reduction <add>, %119, %cst_38 [2] : vector<2x8x16xf32> to vector<2x8xf32>
    %121 = vector.shape_cast %120 : vector<2x8xf32> to vector<2x8x1xf32>
    %cst_39 = arith.constant dense<0.000000e+00> : vector<8x1xf32>
    %122 = vector.multi_reduction <add>, %118, %cst_39 [0] : vector<2x8x1xf32> to vector<8x1xf32>
    %123 = vector.shape_cast %122 : vector<8x1xf32> to vector<1x8x1xf32>
    %cst_40 = arith.constant 3.125000e-02 : f32
    %124 = vector.broadcast %cst_40 : f32 to vector<1x8x1xf32>
    %125 = arith.mulf %123, %124 : vector<1x8x1xf32>
    %cst_41 = arith.constant dense<0.000000e+00> : vector<8x1xf32>
    %126 = vector.multi_reduction <add>, %121, %cst_41 [0] : vector<2x8x1xf32> to vector<8x1xf32>
    %127 = vector.shape_cast %126 : vector<8x1xf32> to vector<1x8x1xf32>
    %cst_42 = arith.constant 3.125000e-02 : f32
    %128 = vector.broadcast %cst_42 : f32 to vector<1x8x1xf32>
    %129 = arith.mulf %127, %128 : vector<1x8x1xf32>
    %130 = arith.mulf %125, %125 : vector<1x8x1xf32>
    %131 = arith.subf %129, %130 : vector<1x8x1xf32>
    %cst_43 = arith.constant 9.99999974E-6 : f32
    %132 = vector.broadcast %cst_43 : f32 to vector<1x8x1xf32>
    %133 = arith.addf %131, %132 : vector<1x8x1xf32>
    %134 = math.rsqrt %133 : vector<1x8x1xf32>
    %135 = vector.shape_cast %115 : vector<8x1xf32> to vector<1x8x1xf32>
    %136 = arith.mulf %134, %135 : vector<1x8x1xf32>
    %137 = arith.mulf %125, %136 : vector<1x8x1xf32>
    %138 = vector.shape_cast %116 : vector<8x1xf32> to vector<1x8x1xf32>
    %139 = arith.subf %138, %137 : vector<1x8x1xf32>
    %140 = vector.broadcast %136 : vector<1x8x1xf32> to vector<2x8x16xf32>
    %141 = arith.mulf %114, %140 : vector<2x8x16xf32>
    %142 = vector.broadcast %139 : vector<1x8x1xf32> to vector<2x8x16xf32>
    %143 = arith.addf %141, %142 : vector<2x8x16xf32>
    %144 = vector.extract_strided_slice %1 {offsets = [3, 0, 0], sizes = [1, 8, 4], strides = [1, 1, 1]} : vector<4x8x4xf32> to vector<1x8x4xf32>
    %145 = vector.shape_cast %144 : vector<1x8x4xf32> to vector<8x4xf32>
    %146 = vector.extract_strided_slice %0 {offsets = [0, 0, 0], sizes = [1, 4, 16], strides = [1, 1, 1]} : vector<2x4x16xf32> to vector<1x4x16xf32>
    %147 = vector.shape_cast %146 : vector<1x4x16xf32> to vector<4x16xf32>
    %cst_44 = arith.constant dense<0.000000e+00> : vector<8x16xf32>
    %148 = tpu.matmul %145, %147, %cst_44 {dimension_numbers = #tpu.dot_dimension_numbers<[1], [0], [0], [1], [0, 0, 1, 1], [], []>} : vector<8x4xf32>, vector<4x16xf32>, vector<8x16xf32> -> vector<8x16xf32>
    %149 = vector.extract_strided_slice %1 {offsets = [3, 0, 0], sizes = [1, 8, 4], strides = [1, 1, 1]} : vector<4x8x4xf32> to vector<1x8x4xf32>
    %150 = vector.shape_cast %149 : vector<1x8x4xf32> to vector<8x4xf32>
    %151 = vector.extract_strided_slice %0 {offsets = [1, 0, 0], sizes = [1, 4, 16], strides = [1, 1, 1]} : vector<2x4x16xf32> to vector<1x4x16xf32>
    %152 = vector.shape_cast %151 : vector<1x4x16xf32> to vector<4x16xf32>
    %cst_45 = arith.constant dense<0.000000e+00> : vector<8x16xf32>
    %153 = tpu.matmul %150, %152, %cst_45 {dimension_numbers = #tpu.dot_dimension_numbers<[1], [0], [0], [1], [0, 0, 1, 1], [], []>} : vector<8x4xf32>, vector<4x16xf32>, vector<8x16xf32> -> vector<8x16xf32>
    %154 = vector.shape_cast %148 : vector<8x16xf32> to vector<1x8x16xf32>
    %155 = vector.shape_cast %153 : vector<8x16xf32> to vector<1x8x16xf32>
    %156 = tpu.concatenate %154, %155 in 0 : vector<1x8x16xf32>, vector<1x8x16xf32> -> vector<2x8x16xf32>
    %157 = vector.extract_strided_slice %3 {offsets = [0, 4], sizes = [8, 1], strides = [1, 1]} : vector<8x6xf32> to vector<8x1xf32>
    %158 = vector.extract_strided_slice %3 {offsets = [0, 5], sizes = [8, 1], strides = [1, 1]} : vector<8x6xf32> to vector<8x1xf32>
    %cst_46 = arith.constant dense<0.000000e+00> : vector<2x8xf32>
    %159 = vector.multi_reduction <add>, %156, %cst_46 [2] : vector<2x8x16xf32> to vector<2x8xf32>
    %160 = vector.shape_cast %159 : vector<2x8xf32> to vector<2x8x1xf32>
    %161 = arith.mulf %156, %156 : vector<2x8x16xf32>
    %cst_47 = arith.constant dense<0.000000e+00> : vector<2x8xf32>
    %162 = vector.multi_reduction <add>, %161, %cst_47 [2] : vector<2x8x16xf32> to vector<2x8xf32>
    %163 = vector.shape_cast %162 : vector<2x8xf32> to vector<2x8x1xf32>
    %cst_48 = arith.constant dense<0.000000e+00> : vector<8x1xf32>
    %164 = vector.multi_reduction <add>, %160, %cst_48 [0] : vector<2x8x1xf32> to vector<8x1xf32>
    %165 = vector.shape_cast %164 : vector<8x1xf32> to vector<1x8x1xf32>
    %cst_49 = arith.constant 3.125000e-02 : f32
    %166 = vector.broadcast %cst_49 : f32 to vector<1x8x1xf32>
    %167 = arith.mulf %165, %166 : vector<1x8x1xf32>
    %cst_50 = arith.constant dense<0.000000e+00> : vector<8x1xf32>
    %168 = vector.multi_reduction <add>, %163, %cst_50 [0] : vector<2x8x1xf32> to vector<8x1xf32>
    %169 = vector.shape_cast %168 : vector<8x1xf32> to vector<1x8x1xf32>
    %cst_51 = arith.constant 3.125000e-02 : f32
    %170 = vector.broadcast %cst_51 : f32 to vector<1x8x1xf32>
    %171 = arith.mulf %169, %170 : vector<1x8x1xf32>
    %172 = arith.mulf %167, %167 : vector<1x8x1xf32>
    %173 = arith.subf %171, %172 : vector<1x8x1xf32>
    %cst_52 = arith.constant 9.99999974E-6 : f32
    %174 = vector.broadcast %cst_52 : f32 to vector<1x8x1xf32>
    %175 = arith.addf %173, %174 : vector<1x8x1xf32>
    %176 = math.rsqrt %175 : vector<1x8x1xf32>
    %177 = vector.shape_cast %157 : vector<8x1xf32> to vector<1x8x1xf32>
    %178 = arith.mulf %176, %177 : vector<1x8x1xf32>
    %179 = arith.mulf %167, %178 : vector<1x8x1xf32>
    %180 = vector.shape_cast %158 : vector<8x1xf32> to vector<1x8x1xf32>
    %181 = arith.subf %180, %179 : vector<1x8x1xf32>
    %182 = vector.broadcast %178 : vector<1x8x1xf32> to vector<2x8x16xf32>
    %183 = arith.mulf %156, %182 : vector<2x8x16xf32>
    %184 = vector.broadcast %181 : vector<1x8x1xf32> to vector<2x8x16xf32>
    %185 = arith.addf %183, %184 : vector<2x8x16xf32>
    %186 = arith.addf %143, %185 : vector<2x8x16xf32>
    %cst_53 = arith.constant 0.000000e+00 : f32
    %187 = vector.broadcast %cst_53 : f32 to vector<2x8x16xf32>
    %188 = arith.maximumf %186, %187 : vector<2x8x16xf32>
    %189 = vector.extract_strided_slice %188 {offsets = [0, 0, 0], sizes = [2, 8, 14], strides = [1, 1, 1]} : vector<2x8x16xf32> to vector<2x8x14xf32>
    %cst_54 = arith.constant dense<0xFF800000> : vector<2x8xf32>
    %190 = vector.multi_reduction <maximumf>, %189, %cst_54 [2] : vector<2x8x14xf32> to vector<2x8xf32>
    %191 = vector.shape_cast %190 : vector<2x8xf32> to vector<2x8x1xf32>
    %c0_55 = arith.constant 0 : index
    %c0_56 = arith.constant 0 : index
    %c0_57 = arith.constant 0 : index
    %192 = vector.load %arg4[%c0_55, %c0_56, %c0_57] : memref<2x8x1xf32, #tpu.memory_space<vmem>>, vector<2x8x1xf32>
    tpu.vector_store %arg4[%c0_55, %c0_56, %c0_57], %191 {strides = array<i32>} : memref<2x8x1xf32, #tpu.memory_space<vmem>>, vector<2x8x1xf32>,
    return
  }
}

</mosaic_0001>

<bundles_post_ra>
// kernel: _lambda_.1
= control target key start
LH: loop header
LB: loop body
LE: loop exit
PB: predicated region body
PF: predicated region fallthrough
CT: control target
= control target key end

     0   :  { %v27_v0 = vlaneseq  ;;  %v2042_v1 = vmov 0.0   ;;  %vm2043_vm0 = vmmov 0   ;;  %v2044_v7 = vmov 1.0   ;;  %s2046_s26 = smov 1   ;;  %s2357_s0 = inlined_call_operand.vmem [shape: f32[2,4,16], index: 0, kind: input, shape index: {}]   ;;  %s2358_s1 = inlined_call_operand.vmem [shape: f32[4,8,4], index: 1, kind: input, shape index: {}]   ;;  %s2359_s3 = inlined_call_operand.vmem [shape: f32[8,6], index: 3, kind: input, shape index: {}]   ;;  %s2360_s2 = inlined_call_operand.vmem [shape: f32[3,8,8], index: 2, kind: input, shape index: {}]   ;;  %s2361_s4 = inlined_call_operand.vmem [shape: f32[2,8,1], index: 4, kind: output, shape index: {}]  }
   0x1   :  { %1894 = vmatprep.subr.mxu0 %v2042_v1  ;;  %1898 = vmatprep.mubr.msk.f32.mxu0 %vm2043_vm0, %v2042_v1  ;;  %v2103_v8 = vld [vmem:[%s2357_s0] sm:$0xf]  ;;  %vm46_vm3 = vcmask 130048   ;;  %v2134_v9 = vld [vmem:[%s2357_s0 + $0x4] sm:$0xf]  ;;  %vm124_vm6 = vcmask 1043456  }
   0x2   :  { %v2080_v2 = vshrl.u32 %v27_v0, 7  ;;  %v31_v3 = vand.u32 127, %v27_v0  ;;  %1901 = vmatprep.subr.mxu1 %v2042_v1  ;;  %1903 = vmatprep.mubr.msk.f32.mxu1 %vm2043_vm0, %v2042_v1  ;;  %vm120_vm7 = vcmask 31744   ;;  %v20_v10 = vld [vmem:[%s2358_s1 + $0x8] sm:$0xff]  ;;  %v19_v11 = vld [vmem:[%s2358_s1] sm:$0xff]  ;;  %v21_v16 = vld [vmem:[%s2358_s1 + $0x10] sm:$0xff] }
   0x3   :  { %v2045_v43 = vmov 0   ;;  %v2224_v55 = vld [vmem:[%s2359_s3] sm:$0xff]  ;;  %v2047_v59 = vmov 1   ;;  %vm900_vm8 = vcmask 64512   ;;  %vm1778_vm9 = vcmask 113664  }
   0x4   :  { %v2086_v4 = vadd.s32 8, %v2080_v2  ;;  %v2088_v5 = vadd.s32 4294967295, %v31_v3  ;;  %v2090_v6 = vadd.s32 1, %v31_v3  ;;  %2030 = vset.pattern.permute.xlu1 %v2045_v43  ;;  %vm1785_vm10 = vcmask 7168  }
   0x6   :  { %vm34_vm1 = vcmp.eq.s32.totalorder %v2086_v4, %v2088_v5  ;;  %vm33_vm2 = vcmp.eq.s32.totalorder %v2080_v2, %v2088_v5  ;;  %vm41_vm4 = vcmp.eq.s32.totalorder %v2086_v4, %v2090_v6  ;;  %vm40_vm5 = vcmp.eq.s32.totalorder %v2080_v2, %v2090_v6 }
   0x7   :  { %1895 = vmatpush3.msk.msra.mxu0 %vm34_vm1, %v2044_v7 }
   0x8   :  { %1896 = vmatprep.subr.mxu0 %v2042_v1 }
   0x9   :  { %1897 = vmatpush3.msk.msra.mxu0 %vm33_vm2, %v2044_v7 }
   0xa   :  { %1899 = vmatmul.mubr.msk.f32.vlgmr.msra.gmra.mxu0 %vm46_vm3, %v2103_v8  ;;  %1911 = vmatprep.subr.mxu0 %v2042_v1 }
   0xb   :  { %1912 = vmatpush3.msk.msra.mxu0 %vm41_vm4, %v2044_v7  ;;  %1915 = vmatprep.mubr.msk.f32.mxu0 %vm2043_vm0, %v2042_v1 }
   0xc   :  { %1913 = vmatprep.subr.mxu0 %v2042_v1 }
   0xd   :  { %1914 = vmatpush3.msk.msra.mxu0 %vm40_vm5, %v2044_v7 }
   0xe   :  { %1916 = vmatmul.mubr.msk.f32.vlgmr.msra.gmra.mxu0 %vm46_vm3, %v2103_v8  ;;  %1923 = vmatprep.subr.mxu0 %v2042_v1 }
   0xf   :  { %1924 = vmatpush3.msk.msra.mxu0 %vm34_vm1, %v2044_v7  ;;  %1927 = vmatprep.mubr.msk.f32.mxu0 %vm2043_vm0, %v2042_v1 }
  0x10   :  { %1925 = vmatprep.subr.mxu0 %v2042_v1 }
  0x11   :  { %1926 = vmatpush3.msk.msra.mxu0 %vm33_vm2, %v2044_v7 }
  0x12   :  { %1928 = vmatmul.mubr.msk.f32.vlgmr.msra.gmra.mxu0 %vm46_vm3, %v2134_v9  ;;  %1935 = vmatprep.subr.mxu0 %v2042_v1 }
  0x13   :  { %1937 = vmatprep.mubr.msk.f32.mxu0 %vm2043_vm0, %v2042_v1  ;;  %1936 = vmatpush3.msk.msra.mxu0 %vm124_vm6, %v2134_v9 }
  0x14   :  { %1947 = vmatprep.subr.mxu0 %v2042_v1 }
  0x16   :  { %1938 = vmatmul.mubr.msk.f32.vlgmr.msra.gmra.mxu0 %vm120_vm7, %v20_v10 }
  0x17   :  { %1949 = vmatprep.mubr.msk.f32.mxu0 %vm2043_vm0, %v2042_v1 }
  0xca   :  { %v116_v12 = vpop.f32.mrf.mxu0 }
  0xcb   :  { %1902 = vmatpush3.msk.msra.mxu1 %vm124_vm6, %v116_v12  ;;  %v23_v12 = vld [vmem:[%s2360_s2] sm:$0xff] }
  0xcc   :  { %v1900_v13 = vpop.f32.mrf.mxu0  ;;  %1904 = vmatmul.mubr.msk.f32.vlgmr.msra.gmra.mxu1 %vm120_vm7, %v19_v11  ;;  %1906 = vmatprep.subr.mxu1 %v2042_v1 }
  0xcd   :  { %1907 = vmatpush3.msk.msra.mxu1 %vm124_vm6, %v2103_v8  ;;  %1908 = vmatprep.mubr.msk.f32.mxu1 %vm2043_vm0, %v2042_v1 }
  0xce   :  { %v339_v14 = vpop.f32.mrf.mxu0  ;;  %1918 = vmatprep.subr.mxu1 %v2042_v1 }
  0xd0   :  { %1909 = vmatmul.mubr.msk.f32.vlgmr.msra.gmra.mxu1 %vm120_vm7, %v20_v10  ;;  %v1917_v15 = vpop.f32.mrf.mxu0 }
  0xd1   :  { %1919 = vmatpush3.msk.msra.mxu1 %vm124_vm6, %v339_v14  ;;  %1920 = vmatprep.mubr.msk.f32.mxu1 %vm2043_vm0, %v2042_v1 }
  0xd2   :  { %v489_v17 = vpop.f32.mrf.mxu0  ;;  %1930 = vmatprep.subr.mxu1 %v2042_v1 }
  0xd4   :  { %1921 = vmatmul.mubr.msk.f32.vlgmr.msra.gmra.mxu1 %vm120_vm7, %v21_v16  ;;  %v1929_v18 = vpop.f32.mrf.mxu0 }
  0xd5   :  { %1931 = vmatpush3.msk.msra.mxu1 %vm124_vm6, %v489_v17  ;;  %1932 = vmatprep.mubr.msk.f32.mxu1 %vm2043_vm0, %v2042_v1 }
  0xd6   :  { %1940 = vmatprep.subr.mxu1 %v2042_v1  ;;  %v634_v19 = vpop.f32.mrf.mxu0 }
  0xd8   :  { %1933 = vmatmul.mubr.msk.f32.vlgmr.msra.gmra.mxu1 %vm120_vm7, %v19_v11  ;;  %v1939_v20 = vpop.f32.mrf.mxu0  ;;  %v24_v11 = vld [vmem:[%s2360_s2 + $0x8] sm:$0xff] }
  0xd9   :  { %1941 = vmatpush3.msk.msra.mxu1 %vm41_vm4, %v2044_v7  ;;  %1944 = vmatprep.mubr.msk.f32.mxu1 %vm2043_vm0, %v2042_v1 }
  0xda   :  { %1942 = vmatprep.subr.mxu1 %v2042_v1 }
  0xdb   :  { %1943 = vmatpush3.msk.msra.mxu1 %vm40_vm5, %v2044_v7 }
  0xdc   :  { %1945 = vmatmul.mubr.msk.f32.vlgmr.msra.gmra.mxu1 %vm46_vm3, %v2134_v9  ;;  %1952 = vmatprep.subr.mxu1 %v2042_v1 }
  0xdd   :  { %1953 = vmatpush3.msk.msra.mxu1 %vm34_vm1, %v2044_v7  ;;  %1956 = vmatprep.mubr.msk.f32.mxu1 %vm2043_vm0, %v2042_v1 }
  0xde   :  { %1954 = vmatprep.subr.mxu1 %v2042_v1 }
  0xdf   :  { %1955 = vmatpush3.msk.msra.mxu1 %vm33_vm2, %v2044_v7 }
  0xe0   :  { %1964 = vmatprep.subr.mxu1 %v2042_v1 }
 0x18c   :  { %v194_v21 = vpop.f32.mrf.mxu1 }
 0x18e   :  { %v1905_v22 = vpop.f32.mrf.mxu1 }
 0x190   :  { %v269_v23 = vpop.f32.mrf.mxu1 }
 0x191   :  { %v270_v25 = vadd.f32 %v269_v23, %v194_v21  ;;  %v25_v21 = vld [vmem:[%s2360_s2 + $0x10] sm:$0xff] }
 0x192   :  { %v1910_v24 = vpop.f32.mrf.mxu1 }
 0x194   :  { %v415_v26 = vpop.f32.mrf.mxu1 }
 0x195   :  { %v419_v27 = vadd.f32 %v415_v26, %v270_v25  ;;  %v22_v26 = vld [vmem:[%s2358_s1 + $0x18] sm:$0xff] }
 0x196   :  { %v1922_v28 = vpop.f32.mrf.mxu1 }
 0x197   :  { %v782_v29 = vsel %vm46_vm3, %v419_v27, 0.0  ;;  %v788_v30 = vmul.f32 %v419_v27, %v419_v27 }
 0x198   :  { %783 = vadd.xlane.f32.xlu0 %v782_v29  ;;  %v562_v31 = vpop.f32.mrf.mxu1 }
 0x199   :  { %v790_v32 = vsel %vm46_vm3, %v788_v30, 0.0  ;;  %v635_v36 = vadd.f32 %v634_v19, %v562_v31 }
 0x19a   :  { %791 = vadd.xlane.f32.xlu1 %v790_v32  ;;  %v1934_v33 = vpop.f32.mrf.mxu1 }
 0x19c   :  { %v704_v34 = vpop.f32.mrf.mxu1 }
 0x19d   :  { %1948 = vmatpush3.msk.msra.mxu0 %vm124_vm6, %v704_v34 }
 0x19e   :  { %v1946_v35 = vpop.f32.mrf.mxu1  ;;  %1950 = vmatmul.mubr.msk.f32.vlgmr.msra.gmra.mxu0 %vm120_vm7, %v21_v16  ;;  %1959 = vmatprep.subr.mxu0 %v2042_v1 }
 0x19f   :  { %1961 = vmatprep.mubr.msk.f32.mxu0 %vm2043_vm0, %v2042_v1 }
 0x221   :  { %v784_v44 = vpop.xlane.xlu0 %783 }
 0x223   :  { %v792_v45 = vpop.xlane.xlu1 %791 }
 0x25e   :  { %v777_v37 = vpop.f32.mrf.mxu0 }
 0x25f   :  { %v781_v38 = vadd.f32 %v777_v37, %v635_v36 }
 0x260   :  { %v1951_v39 = vpop.f32.mrf.mxu0 }
 0x261   :  { %v785_v40 = vsel %vm46_vm3, %v781_v38, 0.0  ;;  %v789_v41 = vmul.f32 %v781_v38, %v781_v38 }
 0x262   :  { %786 = vadd.xlane.f32.xlu0 %v785_v40 }
 0x263   :  { %v793_v42 = vsel %vm46_vm3, %v789_v41, 0.0 }
 0x264   :  { %794 = vadd.xlane.f32.xlu1 %v793_v42 }
 0x2eb   :  { %v787_v46 = vpop.xlane.xlu0 %786 }
 0x2ec   :  { %v796_v47 = vadd.f32 %v787_v46, %v784_v44 }
 0x2ed   :  { %v795_v48 = vpop.xlane.xlu1 %794 }
 0x2ee   :  { %v797_v49 = vmul.f32 0.03125, %v796_v47  ;;  %v798_v50 = vadd.f32 %v795_v48, %v792_v45 }
 0x2f0   :  { %v800_v51 = vmul.f32 %v797_v49, %v797_v49  ;;  %v799_v52 = vmul.f32 0.03125, %v798_v50  ;;  %v2048_v50 = vmov 2  }
 0x2f2   :  { %v801_v53 = vsub.f32 %v799_v52, %v800_v51 }
 0x2f4   :  { %v802_v54 = vadd.f32 1e-05, %v801_v53 }
 0x2f6   :  { %2036 = vrsqrt.f32 %v802_v54 }
 0x303   :  { %v2037_v56 = vpop.eup %2036 }
 0x304   :  { %v804_v57 = vmul.f32 %v2037_v56, %v2224_v55 }
 0x306   :  { %813 = vperm.xlu1 %2030, %v804_v57   ;;  %v805_v58 = vmul.f32 %v804_v57, %v797_v49 }
 0x308   :  { %807 = vrot.lane.b32.xlu0 %v805_v58, %s2046_s26 }
 0x30a   :  { %2031 = vset.pattern.permute.xlu1 %v2047_v59 }
 0x37a   :  { %v808_v60 = vpop.permute.xlu0 %807 }
 0x37b   :  { %v810_v61 = vsub.f32 %v2224_v55, %v808_v60 }
 0x37d   :  { %820 = vperm.xlu1 %2031, %v810_v61  }
 0x381   :  { %v814_v62 = vpop.permute.xlu1 %813  ;;  %2032 = vset.pattern.permute.xlu1 %v2048_v50 }
 0x382   :  { %v816_v63 = vmul.f32 %v814_v62, %v419_v27  ;;  %v817_v14 = vmul.f32 %v814_v62, %v781_v38 }
 0x3f8   :  { %v821_v0 = vpop.permute.xlu1 %820 }
 0x3f9   :  { %v823_v3 = vadd.f32 %v821_v0, %v816_v63  ;;  %v824_v16 = vadd.f32 %v821_v0, %v817_v14 }
 0x3fb   :  { %v825_v10 = vmax.f32 %v823_v3, 0.0  ;;  %v826_v17 = vmax.f32 %v824_v16, 0.0 }
 0x3fd   :  { %1957 = vmatmul.mubr.msk.f32.vlgmr.msra.gmra.mxu1 %vm46_vm3, %v825_v10 }
 0x3fe   :  { %1965 = vmatpush3.msra.mxu1 %v825_v10  ;;  %1966 = vmatprep.mubr.msk.f32.mxu1 %vm2043_vm0, %v2042_v1 }
 0x3ff   :  { %1976 = vmatprep.subr.mxu1 %v2042_v1 }
 0x401   :  { %1967 = vmatmul.mubr.msk.f32.vlgmr.msra.gmra.mxu1 %vm900_vm8, %v24_v11 }
 0x402   :  { %1978 = vmatprep.mubr.msk.f32.mxu1 %vm2043_vm0, %v2042_v1 }
 0x4bd   :  { %v896_v13 = vpop.f32.mrf.mxu1 }
 0x4be   :  { %1960 = vmatpush3.msra.mxu0 %v896_v13 }
 0x4bf   :  { %v1958_v15 = vpop.f32.mrf.mxu1  ;;  %1962 = vmatmul.mubr.msk.f32.vlgmr.msra.gmra.mxu0 %vm900_vm8, %v23_v12  ;;  %1969 = vmatprep.subr.mxu0 %v2042_v1 }
 0x4c0   :  { %1970 = vmatpush3.msk.msra.mxu0 %vm41_vm4, %v2044_v7  ;;  %1973 = vmatprep.mubr.msk.f32.mxu0 %vm2043_vm0, %v2042_v1 }
 0x4c1   :  { %1971 = vmatprep.subr.mxu0 %v2042_v1  ;;  %v1043_v18 = vpop.f32.mrf.mxu1 }
 0x4c2   :  { %1972 = vmatpush3.msk.msra.mxu0 %vm40_vm5, %v2044_v7 }
 0x4c3   :  { %1974 = vmatmul.mubr.msk.f32.vlgmr.msra.gmra.mxu0 %vm46_vm3, %v825_v10  ;;  %1981 = vmatprep.subr.mxu0 %v2042_v1  ;;  %v1968_v19 = vpop.f32.mrf.mxu1 }
 0x4c4   :  { %1982 = vmatpush3.msk.msra.mxu0 %vm34_vm1, %v2044_v7  ;;  %1985 = vmatprep.mubr.msk.f32.mxu0 %vm2043_vm0, %v2042_v1 }
 0x4c5   :  { %1983 = vmatprep.subr.mxu0 %v2042_v1 }
 0x4c6   :  { %1984 = vmatpush3.msk.msra.mxu0 %vm33_vm2, %v2044_v7 }
 0x4c7   :  { %1986 = vmatmul.mubr.msk.f32.vlgmr.msra.gmra.mxu0 %vm46_vm3, %v826_v17  ;;  %1993 = vmatprep.subr.mxu0 %v2042_v1 }
 0x4c8   :  { %1994 = vmatpush3.msra.mxu0 %v826_v17  ;;  %1995 = vmatprep.mubr.msk.f32.mxu0 %vm2043_vm0, %v2042_v1 }
 0x4c9   :  { %2005 = vmatprep.subr.mxu0 %v2042_v1 }
 0x4cb   :  { %1996 = vmatmul.mubr.msk.f32.vlgmr.msra.gmra.mxu0 %vm900_vm8, %v24_v11 }
 0x4cc   :  { %2007 = vmatprep.mubr.msk.f32.mxu0 %vm2043_vm0, %v2042_v1 }
 0x57f   :  { %v970_v20 = vpop.f32.mrf.mxu0 }
 0x580   :  { %v1044_v2 = vadd.f32 %v1043_v18, %v970_v20  ;;  %v2049_v18 = vmov 5  }
 0x581   :  { %v1963_v5 = vpop.f32.mrf.mxu0  ;;  %2035 = vset.pattern.permute.xlu0 %v2049_v18 }
 0x583   :  { %v1113_v22 = vpop.f32.mrf.mxu0 }
 0x584   :  { %1977 = vmatpush3.msra.mxu1 %v1113_v22 }
 0x585   :  { %v1975_v23 = vpop.f32.mrf.mxu0  ;;  %1979 = vmatmul.mubr.msk.f32.vlgmr.msra.gmra.mxu1 %vm900_vm8, %v25_v21  ;;  %1988 = vmatprep.subr.mxu1 %v2042_v1 }
 0x586   :  { %1990 = vmatprep.mubr.msk.f32.mxu1 %vm2043_vm0, %v2042_v1 }
 0x587   :  { %v1260_v24 = vpop.f32.mrf.mxu0 }
 0x588   :  { %1989 = vmatpush3.msra.mxu1 %v1260_v24  ;;  %v2050_v24 = vmov 4  }
 0x589   :  { %v1987_v25 = vpop.f32.mrf.mxu0  ;;  %1991 = vmatmul.mubr.msk.f32.vlgmr.msra.gmra.mxu1 %vm900_vm8, %v23_v12  ;;  %1998 = vmatprep.subr.mxu1 %v2042_v1 }
 0x58a   :  { %1999 = vmatpush3.msk.msra.mxu1 %vm41_vm4, %v2044_v7  ;;  %2002 = vmatprep.mubr.msk.f32.mxu1 %vm2043_vm0, %v2042_v1  ;;  %v2051_v25 = vmov 3  }
 0x58b   :  { %2000 = vmatprep.subr.mxu1 %v2042_v1  ;;  %v1400_v4 = vpop.f32.mrf.mxu0 }
 0x58c   :  { %2001 = vmatpush3.msk.msra.mxu1 %vm40_vm5, %v2044_v7 }
 0x58d   :  { %2003 = vmatmul.mubr.msk.f32.vlgmr.msra.gmra.mxu1 %vm46_vm3, %v826_v17  ;;  %2010 = vmatprep.subr.mxu1 %v2042_v1  ;;  %v1997_v27 = vpop.f32.mrf.mxu0 }
 0x58e   :  { %2011 = vmatpush3.msk.msra.mxu1 %vm124_vm6, %v2103_v8  ;;  %2012 = vmatprep.mubr.msk.f32.mxu1 %vm2043_vm0, %v2042_v1 }
 0x591   :  { %2013 = vmatmul.mubr.msk.f32.vlgmr.msra.gmra.mxu1 %vm120_vm7, %v22_v26 }
 0x645   :  { %v1186_v6 = vpop.f32.mrf.mxu1 }
 0x646   :  { %v2306_v7 = vadd.f32 %v1186_v6, %v1044_v2 }
 0x647   :  { %v1980_v28 = vpop.f32.mrf.mxu1 }
 0x648   :  { %v1545_v29 = vsel %vm46_vm3, %v2306_v7, 0.0  ;;  %v1551_v8 = vmul.f32 %v2306_v7, %v2306_v7 }
 0x649   :  { %1546 = vadd.xlane.f32.xlu1 %v1545_v29  ;;  %v1330_v30 = vpop.f32.mrf.mxu1 }
 0x64a   :  { %v1553_v32 = vsel %vm46_vm3, %v1551_v8, 0.0  ;;  %v1401_v40 = vadd.f32 %v1400_v4, %v1330_v30 }
 0x64b   :  { %v1992_v31 = vpop.f32.mrf.mxu1 }
 0x64d   :  { %1554 = vadd.xlane.f32.xlu1 %v1553_v32  ;;  %v1470_v33 = vpop.f32.mrf.mxu1 }
 0x64e   :  { %2006 = vmatpush3.msra.mxu0 %v1470_v33 }
 0x64f   :  { %v2004_v34 = vpop.f32.mrf.mxu1  ;;  %2008 = vmatmul.mubr.msk.f32.vlgmr.msra.gmra.mxu0 %vm900_vm8, %v25_v21  ;;  %2015 = vmatprep.subr.mxu0 %v2042_v1 }
 0x650   :  { %2016 = vmatpush3.msk.msra.mxu0 %vm124_vm6, %v2134_v9  ;;  %2017 = vmatprep.mubr.msk.f32.mxu0 %vm2043_vm0, %v2042_v1 }
 0x651   :  { %v2320_v35 = vpop.f32.mrf.mxu1 }
 0x652   :  { %v1731_v36 = vsel %vm46_vm3, %v2320_v35, 0.0  ;;  %v1737_v38 = vmul.f32 %v2320_v35, %v2320_v35 }
 0x653   :  { %2018 = vmatmul.mubr.msk.f32.vlgmr.msra.gmra.mxu0 %vm120_vm7, %v22_v26  ;;  %1732 = vadd.xlane.f32.xlu0 %v1731_v36  ;;  %v2014_v37 = vpop.f32.mrf.mxu1 }
 0x654   :  { %v1739_v39 = vsel %vm46_vm3, %v1737_v38, 0.0 }
 0x655   :  { %1740 = vadd.xlane.f32.xlu1 %v1739_v39 }
 0x6d2   :  { %v1547_v53 = vpop.xlane.xlu1 %1546 }
 0x6d6   :  { %v1555_v59 = vpop.xlane.xlu1 %1554 }
 0x6dc   :  { %v1733_v51 = vpop.xlane.xlu0 %1732 }
 0x6de   :  { %v1741_v3 = vpop.xlane.xlu1 %1740 }
 0x70f   :  { %v1540_v9 = vpop.f32.mrf.mxu0 }
 0x710   :  { %v2327_v41 = vadd.f32 %v1540_v9, %v1401_v40 }
 0x711   :  { %v2009_v1 = vpop.f32.mrf.mxu0 }
 0x712   :  { %v1548_v42 = vsel %vm46_vm3, %v2327_v41, 0.0  ;;  %v1552_v46 = vmul.f32 %v2327_v41, %v2327_v41 }
 0x713   :  { %1549 = vadd.xlane.f32.xlu0 %v1548_v42  ;;  %v2331_v43 = vpop.f32.mrf.mxu0 }
 0x714   :  { %v1734_v44 = vsel %vm46_vm3, %v2331_v43, 0.0  ;;  %v1556_v47 = vsel %vm46_vm3, %v1552_v46, 0.0  ;;  %v1738_v48 = vmul.f32 %v2331_v43, %v2331_v43 }
 0x715   :  { %v2019_v45 = vpop.f32.mrf.mxu0 }
 0x716   :  { %v1742_v49 = vsel %vm46_vm3, %v1738_v48, 0.0 }
 0x717   :  { %1735 = vadd.xlane.f32.xlu0 %v1734_v44 }
 0x71b   :  { %1557 = vadd.xlane.f32.xlu0 %v1556_v47 }
 0x71f   :  { %1743 = vadd.xlane.f32.xlu0 %v1742_v49 }
 0x79c   :  { %v1550_v52 = vpop.xlane.xlu0 %1549 }
 0x79d   :  { %v1559_v54 = vadd.f32 %v1550_v52, %v1547_v53 }
 0x79f   :  { %v1560_v57 = vmul.f32 0.03125, %v1559_v54 }
 0x7a0   :  { %v1736_v56 = vpop.xlane.xlu0 %1735 }
 0x7a1   :  { %v1745_v58 = vadd.f32 %v1736_v56, %v1733_v51  ;;  %v1563_v62 = vmul.f32 %v1560_v57, %v1560_v57 }
 0x7a3   :  { %v1746_v63 = vmul.f32 0.03125, %v1745_v58 }
 0x7a4   :  { %v1558_v60 = vpop.xlane.xlu0 %1557 }
 0x7a5   :  { %v1561_v61 = vadd.f32 %v1558_v60, %v1555_v59  ;;  %v1749_v13 = vmul.f32 %v1746_v63, %v1746_v63 }
 0x7a7   :  { %v1562_v0 = vmul.f32 0.03125, %v1561_v61 }
 0x7a8   :  { %v1744_v10 = vpop.xlane.xlu0 %1743 }
 0x7a9   :  { %v1564_v11 = vsub.f32 %v1562_v0, %v1563_v62  ;;  %v1747_v12 = vadd.f32 %v1744_v10, %v1741_v3 }
 0x7ab   :  { %v1565_v14 = vadd.f32 1e-05, %v1564_v11  ;;  %v1748_v15 = vmul.f32 0.03125, %v1747_v12 }
 0x7ad   :  { %2038 = vrsqrt.f32 %v1565_v14  ;;  %v1750_v16 = vsub.f32 %v1748_v15, %v1749_v13 }
 0x7af   :  { %v1751_v17 = vadd.f32 1e-05, %v1750_v16 }
 0x7b1   :  { %2040 = vrsqrt.f32 %v1751_v17 }
 0x7ba   :  { %v2039_v19 = vpop.eup %2038 }
 0x7bb   :  { %v1567_v20 = vmul.f32 %v2039_v19, %v2224_v55 }
 0x7bd   :  { %v1568_v5 = vmul.f32 %v1567_v20, %v1560_v57 }
 0x7be   :  { %v2041_v21 = vpop.eup %2040 }
 0x7bf   :  { %1570 = vrot.lane.b32.xlu1 %v1568_v5, %s2046_s26  ;;  %v1753_v22 = vmul.f32 %v2041_v21, %v2224_v55 }
 0x7c1   :  { %v1754_v23 = vmul.f32 %v1753_v22, %v1746_v63 }
 0x7c3   :  { %1576 = vperm.xlu1 %2032, %v1567_v20   ;;  %1756 = vrot.lane.b32.xlu0 %v1754_v23, %s2046_s26 }
 0x7c7   :  { %2033 = vset.pattern.permute.xlu1 %v2050_v24 }
 0x7c8   :  { %1762 = vperm.xlu1 %2033, %v1753_v22  }
 0x7cc   :  { %2034 = vset.pattern.permute.xlu1 %v2051_v25 }
 0x831   :  { %v1571_v4 = vpop.permute.xlu1 %1570 }
 0x832   :  { %v1573_v26 = vsub.f32 %v2224_v55, %v1571_v4 }
 0x834   :  { %1583 = vperm.xlu1 %2034, %v1573_v26  }
 0x835   :  { %v1757_v27 = vpop.permute.xlu0 %1756 }
 0x836   :  { %v1759_v2 = vsub.f32 %v2224_v55, %v1757_v27 }
 0x838   :  { %1769 = vperm.xlu0 %2035, %v1759_v2  }
 0x83e   :  { %v1577_v6 = vpop.permute.xlu1 %1576 }
 0x83f   :  { %v1579_v8 = vmul.f32 %v1577_v6, %v2306_v7  ;;  %v1580_v30 = vmul.f32 %v1577_v6, %v2327_v41 }
 0x843   :  { %v1763_v28 = vpop.permute.xlu1 %1762 }
 0x844   :  { %v1765_v31 = vmul.f32 %v1763_v28, %v2320_v35  ;;  %v1766_v32 = vmul.f32 %v1763_v28, %v2331_v43 }
 0x8af   :  { %v1584_v29 = vpop.permute.xlu1 %1583 }
 0x8b0   :  { %v1586_v34 = vadd.f32 %v1584_v29, %v1579_v8  ;;  %v1587_v36 = vadd.f32 %v1584_v29, %v1580_v30 }
 0x8b3   :  { %v1770_v33 = vpop.permute.xlu0 %1769 }
 0x8b4   :  { %v1772_v37 = vadd.f32 %v1770_v33, %v1765_v31  ;;  %v1773_v38 = vadd.f32 %v1770_v33, %v1766_v32 }
 0x8b6   :  { %v1775_v39 = vadd.f32 %v1773_v38, %v1587_v36  ;;  %v1774_v40 = vadd.f32 %v1772_v37, %v1586_v34 }
 0x8b8   :  { %v1777_v55 = vmax.f32 %v1775_v39, 0.0  ;;  %v1776_v9 = vmax.f32 %v1774_v40, 0.0 }
 0x8ba   :  { %v1782_v1 = vsel %vm1778_vm9, %v1777_v55, -inf  ;;  %v1779_v42 = vsel %vm1778_vm9, %v1776_v9, -inf }
 0x8bb   :  { %1783 = vmax.xlane.f32.xlu0 %v1782_v1  ;;  %1780 = vmax.xlane.f32.xlu1 %v1779_v42 }
 0x944   :  { %v1784_v7 = vpop.xlane.xlu0 %1783  ;;  %v1781_v41 = vpop.xlane.xlu1 %1780 }
 0x945   :  { %1787 = vst.msk [vmem:[%s2361_s4 + $0x8] sm:$0xff] %vm1785_vm10, %v1784_v7  ;;  %1786 = vst.msk [vmem:[%s2361_s4] sm:$0xff] %vm1785_vm10, %v1781_v41 }

</bundles_post_ra>
